<compile_context>
chip_gen: v5e
topology: v5e:2x2
jax: 0.10.0
libtpu: 0.0.40
codegen_flags: <defaults>
</compile_context>

<pallas_src>
import functools

import jax
import jax.numpy as jnp
from jax.experimental import pallas as pl
from jax.experimental.pallas import tpu as pltpu


def _downsample_kernel(x_ref, s_ref, m_ref, b_ref, o_ref, *, select_first):
    # x_ref: (C, 2*TH, W)        dense slab of input rows (lanes = W)
    # s_ref: (2, W, Wo)          resident 0/1 stride-2 column-selection matrices
    # m_ref: (2, C*TH, C*2*TH)   resident fused row-gather + channel-mix matrices
    # b_ref: (C*TH, 1)           conv bias, repeated per output row
    # o_ref: (C, TH, Wo)         dense output rows (lanes = Wo)
    C, TH2, W = x_ref.shape
    _, TH, Wo = o_ref.shape

    # Merge (C, 2*TH) leading dims; minor dim unchanged, 2*TH is kept a
    # multiple of 8 (or the full H) by the wrapper, so this is layout-friendly.
    xf = x_ref[...].reshape(C * TH2, W)

    if select_first:
        # (C*2TH, W) @ (W, Wo) stride-2 selection, then fused row/channel mix.
        acc = jnp.dot(m_ref[0],
                      jnp.dot(xf, s_ref[0], preferred_element_type=jnp.float32),
                      preferred_element_type=jnp.float32)
        acc += jnp.dot(m_ref[1],
                       jnp.dot(xf, s_ref[1], preferred_element_type=jnp.float32),
                       preferred_element_type=jnp.float32)
    else:
        # Fused row/channel mix at full width, then stride-2 column selection.
        acc = jnp.dot(jnp.dot(m_ref[0], xf, preferred_element_type=jnp.float32),
                      s_ref[0], preferred_element_type=jnp.float32)
        acc += jnp.dot(jnp.dot(m_ref[1], xf, preferred_element_type=jnp.float32),
                       s_ref[1], preferred_element_type=jnp.float32)

    acc = acc + b_ref[...]                     # single bias broadcast per step
    o_ref[...] = acc.reshape(C, TH, Wo).astype(o_ref.dtype)


def _pick_tile_rows(B, C, Ho, W2, itemsize=4):
    """Output rows per grid step: big (amortize step overhead) but VMEM-safe."""
    slab_budget = 8 * 1024 * 1024   # double-buffered input slab per step
    mix_budget = 2 * 1024 * 1024    # resident fused row/channel-mix matrix

    def fits(d, check_mix):
        if Ho % d:
            return False
        if (d % 8) and d != Ho:     # keep (8,128)-aligned dense blocks
            return False
        if C * 2 * d * W2 * itemsize * 2 > slab_budget:
            return False
        if check_mix and 2 * (C * d) * (2 * C * d) * itemsize > mix_budget:
            return False
        return True

    for check_mix in (True, False):
        cands = [d for d in range(1, Ho + 1) if fits(d, check_mix)]
        if cands:
            if B == 1:
                # v7x has 2 TensorCores: keep >= 2 grid steps when possible.
                halved = [d for d in cands if d <= Ho // 2]
                if halved:
                    return max(halved)
            return max(cands)
    return Ho  # full-height fallback (block == full array dims is always legal)


def downsampler_forward(x, conv_w, conv_b, ln_gamma=None, ln_beta=None):
    """Forward pass of Downsampler.

    x:      (B, C, H, W)  (NCHW, like PyTorch)
    conv_w: (C, C, 2, 2)  (OIHW, like PyTorch Conv2d.weight)
    conv_b: (C,)
    ln_gamma / ln_beta: accepted for parity; unused because the reference
    ChannelWiseLayerNorm discards its normalization result (identity).
    returns (B, C, H//2, W//2)
    """
    B, C, H, W = x.shape
    Ho, Wo = H // 2, W // 2
    # PyTorch Conv2d(kernel=2, stride=2, padding=0) silently drops a trailing
    # odd row/column; mirror that instead of erroring on odd H/W.
    if (H != 2 * Ho) or (W != 2 * Wo):
        x = x[:, :, : 2 * Ho, : 2 * Wo]
    W2 = 2 * Wo

    dt = x.dtype
    TH = _pick_tile_rows(B, C, Ho, W2, itemsize=jnp.dtype(dt).itemsize)

    # Stride-2 column selection, built once and kept resident in VMEM:
    #   sel[kw, w, wo] = 1  iff  w == 2*wo + kw.
    wi = jnp.arange(W2)[:, None]
    oi = jnp.arange(Wo)[None, :]
    sel = jnp.stack([wi == 2 * oi, wi == 2 * oi + 1]).astype(dt)       # (2, W2, Wo)

    # Fused row-gather + channel-mix matrices, one per kernel column kw:
    #   mix[kw, co*TH+th, ci*2TH+r] = conv_w[co, ci, kh, kw]  where r == 2*th+kh.
    th_i = jnp.arange(TH)
    r_i = jnp.arange(2 * TH)
    kh_i = jnp.arange(2)
    rowsel = (r_i[None, None, :] ==
              2 * th_i[None, :, None] + kh_i[:, None, None]).astype(dt)  # (2, TH, 2TH)
    mix = jnp.einsum('oihk,htr->kotir', conv_w.astype(dt), rowsel)
    mix = mix.reshape(2, C * TH, C * 2 * TH)

    bias = jnp.repeat(conv_b.astype(dt), TH).reshape(C * TH, 1)

    # MXU MACs / output element: select-first ~ 4*W2 + 4*C*TH,
    # mix-first ~ 2*W2 + 8*C*TH.  Pick the cheaper order statically.
    select_first = W2 < 2 * C * TH

    grid = (B, Ho // TH)
    kernel = functools.partial(_downsample_kernel, select_first=select_first)

    out = pl.pallas_call(
        kernel,
        out_shape=jax.ShapeDtypeStruct((B, C, Ho, Wo), dt),
        grid=grid,
        in_specs=[
            # dense slab of 2*TH input rows, all channels, full width
            pl.BlockSpec((None, C, 2 * TH, W2), lambda b, t: (b, 0, t, 0)),
            # resident constants: block index never changes -> fetched once
            pl.BlockSpec((2, W2, Wo), lambda b, t: (0, 0, 0)),
            pl.BlockSpec((2, C * TH, C * 2 * TH), lambda b, t: (0, 0, 0)),
            pl.BlockSpec((C * TH, 1), lambda b, t: (0, 0)),
        ],
        out_specs=pl.BlockSpec((None, C, TH, Wo), lambda b, t: (b, 0, t, 0)),
        compiler_params=pltpu.CompilerParams(
            dimension_semantics=("parallel", "parallel"),
            vmem_limit_bytes=32 * 1024 * 1024,
        ),
    )(x, sel, mix, bias)
    return out


if __name__ == "__main__":
    B, C, H, W = 2, 4, 16, 16

    key = jax.random.PRNGKey(0)
    kx, kw, kb = jax.random.split(key, 3)

    x = jax.random.normal(kx, (B, C, H, W), dtype=jnp.float32)
    conv_w = jax.random.normal(kw, (C, C, 2, 2), dtype=jnp.float32) * 0.1
    conv_b = jax.random.normal(kb, (C,), dtype=jnp.float32) * 0.1
    # LayerNorm params exist in the module but have no effect on the output
    # (its result is discarded in ChannelWiseLayerNorm.forward).
    ln_gamma = jnp.ones((C,), dtype=jnp.float32)
    ln_beta = jnp.zeros((C,), dtype=jnp.float32)

    fwd = jax.jit(downsampler_forward)
    out = jax.block_until_ready(fwd(x, conv_w, conv_b, ln_gamma, ln_beta))

    # Reference check against XLA's conv (same semantics as PyTorch Conv2d).
    ref = jax.lax.conv_general_dilated(
        x, conv_w, window_strides=(2, 2), padding="VALID",
        dimension_numbers=("NCHW", "OIHW", "NCHW"),
    ) + conv_b[None, :, None, None]
    assert out.shape == (B, C, H // 2, W // 2)
    assert jnp.allclose(out, ref, atol=1e-5, rtol=1e-5), float(
        jnp.max(jnp.abs(out - ref)))

    print("KERNEL_OK")
</pallas_src>

<mosaic_0001>
module attributes {stable_mosaic.version = 11 : i64} {
  func.func @_downsample_kernel(%arg0: i32, %arg1: i32, %arg2: memref<1x4x16x16xf32, #tpu.memory_space<vmem>>, %arg3: memref<2x16x8xf32, #tpu.memory_space<vmem>>, %arg4: memref<2x32x64xf32, #tpu.memory_space<vmem>>, %arg5: memref<32x1xf32, #tpu.memory_space<vmem>>, %arg6: memref<1x4x8x8xf32, #tpu.memory_space<vmem>>) attributes {dimension_semantics = [#tpu.dimension_semantics<parallel>, #tpu.dimension_semantics<parallel>], iteration_bounds = array<i64: 2, 1>, scalar_prefetch = 0 : i64, scratch_operands = 0 : i64, tpu.core_type = #tpu.core_type<tc>, window_params = [{transform_indices = @transform_0, window_bounds = array<i64: 1, 4, 16, 16>}, {pipeline_mode = #tpu.pipeline_mode<synchronous>, transform_indices = @transform_1, window_bounds = array<i64: 2, 16, 8>}, {pipeline_mode = #tpu.pipeline_mode<synchronous>, transform_indices = @transform_2, window_bounds = array<i64: 2, 32, 64>}, {pipeline_mode = #tpu.pipeline_mode<synchronous>, transform_indices = @transform_3, window_bounds = array<i64: 32, 1>}, {transform_indices = @transform_4, window_bounds = array<i64: 1, 4, 8, 8>}]} {
    %c0 = arith.constant 0 : index
    %c0_0 = arith.constant 0 : index
    %c0_1 = arith.constant 0 : index
    %c0_2 = arith.constant 0 : index
    %0 = vector.load %arg2[%c0, %c0_0, %c0_1, %c0_2] : memref<1x4x16x16xf32, #tpu.memory_space<vmem>>, vector<1x4x16x16xf32>
    %1 = vector.shape_cast %0 : vector<1x4x16x16xf32> to vector<4x16x16xf32>
    %2 = vector.shape_cast %1 : vector<4x16x16xf32> to vector<64x16xf32>
    %c0_3 = arith.constant 0 : index
    %c0_4 = arith.constant 0 : index
    %c0_5 = arith.constant 0 : index
    %3 = vector.load %arg4[%c0_3, %c0_4, %c0_5] : memref<2x32x64xf32, #tpu.memory_space<vmem>>, vector<1x32x64xf32>
    %4 = vector.shape_cast %3 : vector<1x32x64xf32> to vector<32x64xf32>
    %c0_6 = arith.constant 0 : index
    %c0_7 = arith.constant 0 : index
    %c0_8 = arith.constant 0 : index
    %5 = vector.load %arg3[%c0_6, %c0_7, %c0_8] : memref<2x16x8xf32, #tpu.memory_space<vmem>>, vector<1x16x8xf32>
    %6 = vector.shape_cast %5 : vector<1x16x8xf32> to vector<16x8xf32>
    %cst = arith.constant dense<0.000000e+00> : vector<64x8xf32>
    %7 = tpu.matmul %2, %6, %cst {dimension_numbers = #tpu.dot_dimension_numbers<[1], [0], [0], [1], [0, 0, 1, 1], [], []>} : vector<64x16xf32>, vector<16x8xf32>, vector<64x8xf32> -> vector<64x8xf32>
    %cst_9 = arith.constant dense<0.000000e+00> : vector<32x8xf32>
    %8 = tpu.matmul %4, %7, %cst_9 {dimension_numbers = #tpu.dot_dimension_numbers<[1], [0], [0], [1], [0, 0, 1, 1], [], []>} : vector<32x64xf32>, vector<64x8xf32>, vector<32x8xf32> -> vector<32x8xf32>
    %c1 = arith.constant 1 : index
    %c0_10 = arith.constant 0 : index
    %c0_11 = arith.constant 0 : index
    %9 = vector.load %arg4[%c1, %c0_10, %c0_11] : memref<2x32x64xf32, #tpu.memory_space<vmem>>, vector<1x32x64xf32>
    %10 = vector.shape_cast %9 : vector<1x32x64xf32> to vector<32x64xf32>
    %c1_12 = arith.constant 1 : index
    %c0_13 = arith.constant 0 : index
    %c0_14 = arith.constant 0 : index
    %11 = vector.load %arg3[%c1_12, %c0_13, %c0_14] : memref<2x16x8xf32, #tpu.memory_space<vmem>>, vector<1x16x8xf32>
    %12 = vector.shape_cast %11 : vector<1x16x8xf32> to vector<16x8xf32>
    %cst_15 = arith.constant dense<0.000000e+00> : vector<64x8xf32>
    %13 = tpu.matmul %2, %12, %cst_15 {dimension_numbers = #tpu.dot_dimension_numbers<[1], [0], [0], [1], [0, 0, 1, 1], [], []>} : vector<64x16xf32>, vector<16x8xf32>, vector<64x8xf32> -> vector<64x8xf32>
    %cst_16 = arith.constant dense<0.000000e+00> : vector<32x8xf32>
    %14 = tpu.matmul %10, %13, %cst_16 {dimension_numbers = #tpu.dot_dimension_numbers<[1], [0], [0], [1], [0, 0, 1, 1], [], []>} : vector<32x64xf32>, vector<64x8xf32>, vector<32x8xf32> -> vector<32x8xf32>
    %15 = arith.addf %8, %14 : vector<32x8xf32>
    %c0_17 = arith.constant 0 : index
    %c0_18 = arith.constant 0 : index
    %16 = vector.load %arg5[%c0_17, %c0_18] : memref<32x1xf32, #tpu.memory_space<vmem>>, vector<32x1xf32>
    %17 = vector.broadcast %16 : vector<32x1xf32> to vector<32x8xf32>
    %18 = arith.addf %15, %17 : vector<32x8xf32>
    %19 = vector.shape_cast %18 : vector<32x8xf32> to vector<4x8x8xf32>
    %c0_19 = arith.constant 0 : index
    %c0_20 = arith.constant 0 : index
    %c0_21 = arith.constant 0 : index
    %c0_22 = arith.constant 0 : index
    %20 = vector.load %arg6[%c0_19, %c0_20, %c0_21, %c0_22] : memref<1x4x8x8xf32, #tpu.memory_space<vmem>>, vector<1x4x8x8xf32>
    %21 = vector.shape_cast %20 : vector<1x4x8x8xf32> to vector<4x8x8xf32>
    %22 = vector.shape_cast %19 : vector<4x8x8xf32> to vector<1x4x8x8xf32>
    tpu.vector_store %arg6[%c0_19, %c0_20, %c0_21, %c0_22], %22 {strides = array<i32>} : memref<1x4x8x8xf32, #tpu.memory_space<vmem>>, vector<1x4x8x8xf32>,
    return
  }
  func.func @transform_0(%arg0: i32, %arg1: i32) -> (i32, i32, i32, i32) {
    %c0_i32 = arith.constant 0 : i32
    %c0_i32_0 = arith.constant 0 : i32
    %c0_i32_1 = arith.constant 0 : i32
    return %arg0, %c0_i32, %arg1, %c0_i32_0 : i32, i32, i32, i32
  }
  func.func @transform_1(%arg0: i32, %arg1: i32) -> (i32, i32, i32) {
    %c0_i32 = arith.constant 0 : i32
    %c0_i32_0 = arith.constant 0 : i32
    %c0_i32_1 = arith.constant 0 : i32
    %c0_i32_2 = arith.constant 0 : i32
    return %c0_i32, %c0_i32_0, %c0_i32_1 : i32, i32, i32
  }
  func.func @transform_2(%arg0: i32, %arg1: i32) -> (i32, i32, i32) {
    %c0_i32 = arith.constant 0 : i32
    %c0_i32_0 = arith.constant 0 : i32
    %c0_i32_1 = arith.constant 0 : i32
    %c0_i32_2 = arith.constant 0 : i32
    return %c0_i32, %c0_i32_0, %c0_i32_1 : i32, i32, i32
  }
  func.func @transform_3(%arg0: i32, %arg1: i32) -> (i32, i32) {
    %c0_i32 = arith.constant 0 : i32
    %c0_i32_0 = arith.constant 0 : i32
    %c0_i32_1 = arith.constant 0 : i32
    return %c0_i32, %c0_i32_0 : i32, i32
  }
  func.func @transform_4(%arg0: i32, %arg1: i32) -> (i32, i32, i32, i32) {
    %c0_i32 = arith.constant 0 : i32
    %c0_i32_0 = arith.constant 0 : i32
    %c0_i32_1 = arith.constant 0 : i32
    return %arg0, %c0_i32, %arg1, %c0_i32_0 : i32, i32, i32, i32
  }
}

</mosaic_0001>

<bundles_post_ra>
// kernel: downsampler_forward.1
= control target key start
LH: loop header
LB: loop body
LE: loop exit
PB: predicated region body
PF: predicated region fallthrough
CT: control target
= control target key end

     0   :  { %9 = vsyncpa [#allocation3], 0  ;;  %s956_s0 = inlined_call_operand.vmem [shape: f32[2,4,16,16], index: 0, kind: input, shape index: {}]   ;;  %s957_s1 = inlined_call_operand.vmem [shape: f32[2,16,8], index: 1, kind: input, shape index: {}]   ;;  %s958_s2 = inlined_call_operand.vmem [shape: f32[2,32,64], index: 2, kind: input, shape index: {}]   ;;  %s959_s3 = inlined_call_operand.vmem [shape: f32[32,1], index: 3, kind: input, shape index: {}]   ;;  %s960_s4 = inlined_call_operand.hbm [shape: f32[2,4,8,8], index: 4, kind: output, shape index: {}]  }
   0x1   :  { %11 = vsyncpa [#allocation3 + $0x1], 0  ;;  %s779_s15 = smov 0   ;;  %s781_s16 = smov 0  }
   0x2   :  { %s783_s17 = smov 0   ;;  %s785_s18 = smov 0  }
   0x3   :  { %s787_s19 = smov 0   ;;  %s789_s20 = smov 0  }
   0x4 LB: > { %s566_s21 = sadd.s32 4294967295, %s749_s20   ;;  %s567_s22 = sadd.s32 4294967294, %s749_s20   ;;  %s749_s20 = sphi %s789_s20, %s17_s20   ;;  %s745_s19 = sphi %s787_s19, %s967_s19   ;;  %s741_s18 = sphi %s785_s18, %s966_s18   ;;  %s737_s17 = sphi %s783_s17, %s965_s17   ;;  %s733_s16 = sphi %s781_s16, %s964_s16   ;;  %s729_s15 = sphi %s779_s15, %s963_s15  }
   0x5   : > { %s29_s23 = sadd.s32 1, %s745_s19  ;;  %s129_s24 = sadd.s32 1, %s737_s17 }
   0x6   : > { %p31_p0 = scmp.ge.s32.totalorder %s29_s23, 2  ;;  %p139_p1 = scmp.ne.s32.totalorder %s737_s17, %s733_s16 }
   0x7   : > { %p140_p2 = scmp.eq.s32.totalorder %s566_s21, 1  ;;  %p145_p3 = scmp.ne.s32.totalorder %s733_s16, %s729_s15 }
   0x8   : > { %s969_s23 = smov (%p31_p0, %s29_s23), 0  ;;  %p146_p5 = scmp.eq.s32.totalorder %s567_s22, 1 }
   0x9   : > { %p819_p4 = por %p140_p2, %p139_p1  ;;  %s124_s26 = ssub.s32 %s745_s19, %s969_s23 }
   0xa   : > { %p570_p6 = scmp.ge.s32.totalorder %s749_s20, 1  ;;  %p127_p7 = scmp.eq.s32.totalorder %s124_s26, 0 }
   0xb   : > { %p826_p8 = por %p146_p5, %p145_p3  ;;  %p186_p9 = scmp.lt.s32.totalorder %s749_s20, 3 }
   0xc   : > { %s832_s28 = scalar_select %p127_p7, %s737_s17, %s129_s24  }
   0xd   : > { %p187_p10 = pnand %p570_p6, %p186_p9 }
   0xe   : > { %p217_p11 = scmp.lt.s32.totalorder (!%p187_p10), %s741_s18, 1  ;;  %s213_s8 = sand.u32 (!%p187_p10), 1, %s733_s16  }
   0xf   : > { %190 = sbr.rel (%p187_p10) target bundleno = 386 (0x182), region = 36  ;;  %s571_s9 = sshll.u32 (!%p187_p10), %s213_s8, 5 }
  0x10   : > { %s215_s10 = scalar_lea.vmem (!%p187_p10), [#allocation2], %s571_s9  ;;  %s691_s5 = scalar_lea.hbm (!%p187_p10), %s960_s4, 64 }
  0x14   : > { %v239_v0 = vld [vmem:[%s957_s1 + $0x8] sm:$0xff]  ;;  %v587_v1 = vld [vmem:[%s957_s1 + $0x18] sm:$0xff]  ;;  %v238_v2 = vld [vmem:[%s957_s1] sm:$0xff]  ;;  %s218_s11 = scalar_select %p217_p11, %s741_s18, 1  ;;  %vm240_vm0 = vcmask 130048   ;;  %v751_v29 = vmov 0  }
  0x15   : > { %279 = vmatpush.msra.mxu0 %v239_v0  ;;  %328 = vmatpush.msra.mxu1 %v587_v1  ;;  %v586_v3 = vld [vmem:[%s957_s1 + $0x10] sm:$0xff]  ;;  %v438_v28 = vld [vmem:[%s959_s3] sm:$0xff]  ;;  %v439_v31 = vld [vmem:[%s959_s3 + $0x8] sm:$0xff]  ;;  %vm355_vm1 = vcmask 523264   ;;  %vm466_vm2 = vcmask 64512  }
  0x16   : > { %s609_s12 = sshll.u32 %s218_s11, 6  ;;  %669 = vset.pattern.permute.xlu0 %v751_v29  ;;  %670 = vset.pattern.permute.xlu1 %v751_v29  ;;  %v440_v30 = vld [vmem:[%s959_s3 + $0x10] sm:$0xff]  ;;  %v582_v32 = vld [vmem:[%s958_s2 + $0x20] sm:$0xff]  ;;  %v441_v34 = vld [vmem:[%s959_s3 + $0x18] sm:$0xff]  ;;  %s610_s11 = sshll.u32 %s741_s18, 5 }
  0x17   : > { %280 = vmatpush.msra.mxu0 %v238_v2  ;;  %329 = vmatpush.msra.mxu1 %v586_v3  ;;  %s224_s21 = scalar_lea.vmem %s956_s0, %s609_s12  ;;  %v234_v33 = vld [vmem:[%s958_s2] sm:$0xff]  ;;  %v583_v35 = vld [vmem:[%s958_s2 + $0x28] sm:$0xff]  ;;  %v584_v37 = vld [vmem:[%s958_s2 + $0x30] sm:$0xff]  ;;  %s484_s14 = scalar_lea.hbm %s960_s4, %s610_s11 }
  0x18   : > { %v226_v4 = vld [vmem:[%s224_s21] sm:$0xff]  ;;  %v227_v5 = vld [vmem:[%s224_s21 + $0x8] sm:$0xff]  ;;  %v228_v6 = vld [vmem:[%s224_s21 + $0x10] sm:$0xff]  ;;  %444 = vperm.xlu0 %669, %v438_v28   ;;  %454 = vperm.xlu1 %670, %v440_v30   ;;  %s487_s22 = sshll.u32 %s484_s14, 4  ;;  %s472_s18 = scalar_lea.sflag [#allocation3], %s213_s8  ;;  %s488_s22 = int_to_ptr.hbm [resolvable:$true] %s487_s22 }
  0x19   : > { %574 = vmatmul.msk.f32.vlgmr.msra.gmra.mxu0 %vm240_vm0, %v226_v4  ;;  %588 = vmatmul.msk.f32.vlgmr.msra.gmra.mxu1 %vm240_vm0, %v226_v4  ;;  %v229_v7 = vld [vmem:[%s224_s21 + $0x18] sm:$0xff]  ;;  %v230_v8 = vld [vmem:[%s224_s21 + $0x20] sm:$0xff]  ;;  %v231_v9 = vld [vmem:[%s224_s21 + $0x28] sm:$0xff]  ;;  %s685_s24 = sshra.s32 %s488_s22, 4  ;;  %s686_s24 = int_to_ptr.hbm [resolvable:$true] %s685_s24 }
  0x1a   : > { %v232_v10 = vld [vmem:[%s224_s21 + $0x30] sm:$0xff]  ;;  %v233_v11 = vld [vmem:[%s224_s21 + $0x38] sm:$0xff]  ;;  %v235_v36 = vld [vmem:[%s958_s2 + $0x8] sm:$0xff]  ;;  %s485_s21 = sshll.u32 %s215_s10, 4  ;;  %s687_s26 = scalar_lea.hbm %s686_s24, 32  ;;  %s486_s21 = int_to_ptr.vmem [resolvable:$true] %s485_s21 }
  0x1b   : > { %v236_v38 = vld [vmem:[%s958_s2 + $0x10] sm:$0xff]  ;;  %v585_v39 = vld [vmem:[%s958_s2 + $0x38] sm:$0xff]  ;;  %p688_p12 = scmp.ne.s32.totalorder %s686_s24, %s687_s26  ;;  %p692_p1 = scmp.lt.s32.totalorder %s686_s24, %s960_s4 }
  0x1c   : > { %v237_v40 = vld [vmem:[%s958_s2 + $0x18] sm:$0xff]  ;;  %p693_p2 = scmp.lt.s32.totalorder %s691_s5, %s687_s26 }
  0x1d   : > { %p689_p13 = pnand %p688_p12, %p819_p4 }
  0x1e   : > { %p694_p3 = por %p693_p2, %p692_p1 }
  0x1f   : > { %p690_p0 = pneg %p689_p13 }
  0x20   : > { %449 = vperm.xlu0 %669, %v439_v31   ;;  %459 = vperm.xlu1 %670, %v441_v34  }
  0x21   : > { %575 = vmatmul.msk.f32.gmra.mxu0 %vm240_vm0, %v227_v5  ;;  %589 = vmatmul.msk.f32.gmra.mxu1 %vm240_vm0, %v227_v5  ;;  %p695_p5 = pnand %p694_p3, %p690_p0 }
  0x29   : > { %576 = vmatmul.msk.f32.gmra.mxu0 %vm240_vm0, %v228_v6  ;;  %590 = vmatmul.msk.f32.gmra.mxu1 %vm240_vm0, %v228_v6 }
  0x31   : > { %577 = vmatmul.msk.f32.gmra.mxu0 %vm240_vm0, %v229_v7  ;;  %591 = vmatmul.msk.f32.gmra.mxu1 %vm240_vm0, %v229_v7 }
  0x39   : > { %578 = vmatmul.msk.f32.gmra.mxu0 %vm240_vm0, %v230_v8  ;;  %592 = vmatmul.msk.f32.gmra.mxu1 %vm240_vm0, %v230_v8 }
  0x41   : > { %579 = vmatmul.msk.f32.gmra.mxu0 %vm240_vm0, %v231_v9  ;;  %593 = vmatmul.msk.f32.gmra.mxu1 %vm240_vm0, %v231_v9 }
  0x49   : > { %580 = vmatmul.msk.f32.gmra.mxu0 %vm240_vm0, %v232_v10  ;;  %594 = vmatmul.msk.f32.gmra.mxu1 %vm240_vm0, %v232_v10 }
  0x51   : > { %581 = vmatmul.msk.f32.gmra.mxu0 %vm240_vm0, %v233_v11  ;;  %595 = vmatmul.msk.f32.gmra.mxu1 %vm240_vm0, %v233_v11 }
  0x8a   : > { %v445_v41 = vpop.permute.xlu0 %444  ;;  %v455_v51 = vpop.permute.xlu1 %454 }
  0x92   : > { %v450_v46 = vpop.permute.xlu0 %449  ;;  %v460_v59 = vpop.permute.xlu1 %459 }
  0x96   : > { %v282_v12 = vpop.f32.mrf.mxu0  ;;  %v331_v13 = vpop.f32.mrf.mxu1 }
  0x9e   : > { %v285_v14 = vpop.f32.mrf.mxu0  ;;  %v334_v15 = vpop.f32.mrf.mxu1 }
  0xa6   : > { %v288_v16 = vpop.f32.mrf.mxu0  ;;  %v337_v17 = vpop.f32.mrf.mxu1 }
  0xae   : > { %v291_v18 = vpop.f32.mrf.mxu0  ;;  %v340_v19 = vpop.f32.mrf.mxu1 }
  0xb6   : > { %v294_v20 = vpop.f32.mrf.mxu0  ;;  %v343_v21 = vpop.f32.mrf.mxu1 }
  0xbe   : > { %v297_v22 = vpop.f32.mrf.mxu0  ;;  %v346_v23 = vpop.f32.mrf.mxu1 }
  0xc6   : > { %v300_v24 = vpop.f32.mrf.mxu0  ;;  %v349_v25 = vpop.f32.mrf.mxu1 }
  0xce   : > { %v303_v26 = vpop.f32.mrf.mxu0  ;;  %v352_v27 = vpop.f32.mrf.mxu1 }
  0xcf   : > { %376 = vmatpush.msra.mxu2 %v352_v27  ;;  %417 = vmatpush.msra.mxu3 %v303_v26 }
  0xd1   : > { %377 = vmatpush.msra.mxu2 %v349_v25  ;;  %418 = vmatpush.msra.mxu3 %v300_v24 }
  0xd3   : > { %378 = vmatpush.msra.mxu2 %v346_v23  ;;  %419 = vmatpush.msra.mxu3 %v297_v22 }
  0xd5   : > { %379 = vmatpush.msra.mxu2 %v343_v21  ;;  %420 = vmatpush.msra.mxu3 %v294_v20 }
  0xd7   : > { %380 = vmatpush.msra.mxu2 %v340_v19  ;;  %421 = vmatpush.msra.mxu3 %v291_v18 }
  0xd9   : > { %381 = vmatpush.msra.mxu2 %v337_v17  ;;  %422 = vmatpush.msra.mxu3 %v288_v16 }
  0xdb   : > { %382 = vmatpush.msra.mxu2 %v334_v15  ;;  %423 = vmatpush.msra.mxu3 %v285_v14 }
  0xdd   : > { %383 = vmatpush.msra.mxu2 %v331_v13  ;;  %424 = vmatpush.msra.mxu3 %v282_v12 }
  0xde   : > { %596 = vmatmul.msk.f32.vlgmr.msra.gmra.mxu2 %vm355_vm1, %v582_v32  ;;  %600 = vmatmul.msk.f32.vlgmr.msra.gmra.mxu3 %vm355_vm1, %v234_v33 }
  0xe6   : > { %597 = vmatmul.msk.f32.gmra.mxu2 %vm355_vm1, %v583_v35  ;;  %601 = vmatmul.msk.f32.gmra.mxu3 %vm355_vm1, %v235_v36 }
  0xee   : > { %598 = vmatmul.msk.f32.gmra.mxu2 %vm355_vm1, %v584_v37  ;;  %602 = vmatmul.msk.f32.gmra.mxu3 %vm355_vm1, %v236_v38 }
  0xf6   : > { %599 = vmatmul.msk.f32.gmra.mxu2 %vm355_vm1, %v585_v39  ;;  %603 = vmatmul.msk.f32.gmra.mxu3 %vm355_vm1, %v237_v40 }
 0x161   : > { %v385_v42 = vpop.f32.mrf.mxu2  ;;  %v426_v43 = vpop.f32.mrf.mxu3 }
 0x162   : > { %v427_v44 = vadd.f32 %v426_v43, %v385_v42 }
 0x164   : > { %v462_v45 = vadd.f32 %v445_v41, %v427_v44 }
 0x166   : > { %467 = vst.msk [vmem:[%s215_s10] sm:$0xff] %vm466_vm2, %v462_v45 }
 0x169   : > { %v388_v47 = vpop.f32.mrf.mxu2  ;;  %v429_v48 = vpop.f32.mrf.mxu3 }
 0x16a   : > { %v430_v49 = vadd.f32 %v429_v48, %v388_v47 }
 0x16c   : > { %v463_v50 = vadd.f32 %v450_v46, %v430_v49 }
 0x16e   : > { %468 = vst.msk [vmem:[%s215_s10 + $0x8] sm:$0xff] %vm466_vm2, %v463_v50 }
 0x171   : > { %v391_v52 = vpop.f32.mrf.mxu2  ;;  %v432_v53 = vpop.f32.mrf.mxu3 }
 0x172   : > { %v433_v54 = vadd.f32 %v432_v53, %v391_v52 }
 0x174   : > { %v464_v55 = vadd.f32 %v455_v51, %v433_v54 }
 0x176   : > { %469 = vst.msk [vmem:[%s215_s10 + $0x10] sm:$0xff] %vm466_vm2, %v464_v55 }
 0x179   : > { %v394_v56 = vpop.f32.mrf.mxu2  ;;  %v435_v57 = vpop.f32.mrf.mxu3 }
 0x17a   : > { %v436_v58 = vadd.f32 %v435_v57, %v394_v56 }
 0x17c   : > { %v465_v60 = vadd.f32 %v460_v59, %v436_v58 }
 0x17e   : > { %470 = vst.msk [vmem:[%s215_s10 + $0x18] sm:$0xff] %vm466_vm2, %v465_v60 }
 0x17f   : > { %698 = shalt.err (!%p695_p5)
}
 0x180   : > { %s752_s8 = smov 128   ;;  %s753_s9 = smov 8  }
 0x181   : > { %611 = dma.vmem_to_hbm [thread:$0]  (%p819_p4), %s486_s21, 512, %s488_s22, %s472_s18, %s752_s8, %s752_s8, %s753_s9  }
 0x182 PF: > { %p617_p6 = scmp.ge.s32.totalorder %s749_s20, 2  ;;  %s502_s10 = sand.u32 1, %s729_s15  }
 0x183   : > { %s503_s11 = scalar_lea.sflag [#allocation3], %s502_s10 }
 0x184   : > { %p614_p7 = pnand %p617_p6, %p826_p8 }
 0x186   : > { %p615_p9 = pneg %p614_p7 }
 0x188   : > { %724 = dma.done.wait (%p615_p9), %s503_s11, 512  }
 0x189   : > { %726 = vsyncadd (%p615_p9), %s503_s11, 4294966784  ;;  %s17_s20 = sadd.s32 1, %s749_s20   ;;  %s963_s15 = smov %s733_s16 }
 0x18a   : > { %p14_p10 = scmp.ge.s32.totalorder %s17_s20, 4   ;;  %s964_s16 = smov %s737_s17 }
 0x18b   : > { %s965_s17 = smov %s832_s28  ;;  %s966_s18 = smov %s745_s19 }
 0x18c   : > { %s967_s19 = smov %s969_s23  ;;  %16 = sbr.rel (!%p14_p10) target bundleno = 4 (0x4), region = 73 }
 0x191   :  { %509 = vsyncpa [#allocation3], 1 }
 0x192   :  { %511 = vsyncpa [#allocation3 + $0x1], 1 }

</bundles_post_ra>
